<compile_context>
chip_gen: v6e
topology: v6e:2x2x1
jax: 0.10.0
libtpu: 0.0.40
codegen_flags: <defaults>
</compile_context>

<pallas_src>
import functools

import jax
import jax.numpy as jnp
from jax import lax
from jax.experimental import pallas as pl
from jax.experimental.pallas import tpu as pltpu


# --------------------------------------------------------------------------
# Kernel 1: conv (im2col, all positions in one matmul) + bn1 + relu
#           + fc (accumulated over positions) + bn2 + relu  ->  h (B, Dp) bf16
#
#   patches_ref: (P*B, 16)  f32  row = p*B + b, 9 real taps zero-padded to 16
#   convw_ref:   (16, C)    f32  3x3 kernel flattened (kh*3+kw), zero padded
#   s1/b1:       (1, C)     f32  folded bn1 (+ conv bias)
#   fcw_ref:     (P, C, Dp) f32  torch fc weight reordered [p, c, d], D padded
#   s2/b2:       (1, Dp)    f32  folded bn2 (+ fc bias), zero in the padding
#   h_ref:       (B, Dp)    bf16 feature output (fed straight into kernel 2)
# --------------------------------------------------------------------------
def _feature_kernel(patches_ref, convw_ref, s1_ref, b1_ref,
                    fcw_ref, s2_ref, b2_ref, h_ref,
                    a_ref, acc_ref, *, batch, n_pos):
    # Conv for every spatial position at once: (P*B, 16) @ (16, C).
    a = jnp.dot(patches_ref[...], convw_ref[...],
                preferred_element_type=jnp.float32)                   # (P*B, C)
    a_ref[...] = jnp.maximum(a * s1_ref[...] + b1_ref[...], 0.0)      # bn1+relu

    # FC: h[b, :] = sum_p a[p*B + b, :] @ fcw[p]   (torch hidden index c*P + p).
    # A single (B, C*P) @ (C*P, Dp) matmul would need an in-kernel
    # (P*B, C) -> (B, P*C) relayout; instead the per-position accumulation is
    # kept but hoisted inside this single grid step (no per-step overhead).
    acc_ref[...] = jnp.zeros_like(acc_ref)

    def body(p, carry):
        row = pl.multiple_of(p * batch, batch)                        # aligned
        ap = a_ref[pl.ds(row, batch), :]                              # (B, C)
        acc_ref[...] += jnp.dot(ap, fcw_ref[p],
                                preferred_element_type=jnp.float32)   # (B, Dp)
        return carry

    # For real ConvE sizes (P ~ 300) a modest unroll (e.g. 8) helps; kept
    # rolled here — the feature stage is not the hot loop.
    lax.fori_loop(0, n_pos, body, 0)

    h = jnp.maximum(acc_ref[...] * s2_ref[...] + b2_ref[...], 0.0)    # bn2+relu
    h_ref[...] = h.astype(h_ref.dtype)


# --------------------------------------------------------------------------
# Kernel 2: streamed scoring   sigmoid(h @ ent_t + b)   tiled over entities
# --------------------------------------------------------------------------
def _score_kernel(h_ref, ent_ref, bias_ref, out_ref):
    # h_ref: (B, Dp) bf16 resident; ent_ref: (Dp, TN) bf16 streamed tile.
    logits = jnp.dot(h_ref[...], ent_ref[...],
                     preferred_element_type=jnp.float32)              # (B, TN)
    out_ref[...] = jax.nn.sigmoid(logits + bias_ref[...]).astype(out_ref.dtype)


# --------------------------------------------------------------------------
# One-time parameter preparation (hoisted out of the forward path)
# --------------------------------------------------------------------------
def _bn_fold(gamma, beta, mean, var, eps=1e-5):
    scale = gamma * lax.rsqrt(var + eps)
    return scale, beta - mean * scale


def prepare_params(params, *, emb_dim1, tile_n=2048):
    """Load-time prep: BN folds, FC weight reorder, entity table transpose /
    bf16 cast / padding, entity bias padding.  Done ONCE, not per forward."""
    emb_e = params["emb_e"]            # (N_ent, D) f32
    emb_rel = params["emb_rel"]        # (N_rel, D) f32
    conv_w = params["conv_w"]          # (C, 1, 3, 3)
    conv_b = params["conv_b"]          # (C,)   (zeros if use_bias=False)
    fc_w = params["fc_w"]              # (D, hidden)  torch Linear layout
    fc_b = params["fc_b"]              # (D,)
    b_ent = params["b"]                # (N_ent,)

    n_ent, d = emb_e.shape
    d1 = emb_dim1
    d2 = d // d1
    c = conv_w.shape[0]
    hp, wp = 2 * d1 - 2, d2 - 2
    p = hp * wp

    # Pad the embedding dim to a 128 multiple (200 -> 256 for real ConvE):
    # avoids ragged MXU K and masked partial stores on the (B, Dp) feature.
    dp = 128 * ((d + 127) // 128)

    # Entity-tile width: multiple of 256 (v6e/v7x MXU width), clamped so tiny
    # tables are not over-padded.  See per-generation VMEM notes in the header.
    tile_n = max(256, 128 * ((tile_n + 127) // 128))
    tile_n = min(tile_n, 256 * ((n_ent + 255) // 256))
    n_pad = tile_n * ((n_ent + tile_n - 1) // tile_n)

    # bn0 (single channel).
    s0, t0 = _bn_fold(params["bn0_g"], params["bn0_b"],
                      params["bn0_m"], params["bn0_v"])

    # Conv weight: (C,1,3,3) -> (9, C), zero-padded to (16, C) so the im2col
    # contraction dim is sublane-aligned.
    convw2 = jnp.zeros((16, c), jnp.float32).at[:9, :].set(conv_w.reshape(c, 9).T)

    # bn1 with the conv bias folded in.
    s1, t1 = _bn_fold(params["bn1_g"], params["bn1_b"],
                      params["bn1_m"], params["bn1_v"])
    b1f = (s1 * conv_b + t1).reshape(1, c)
    s1 = s1.reshape(1, c)

    # Torch flattens (C, Hp, Wp) channel-major (hidden index = c*P + p);
    # reorder once to (P, C, D) and zero-pad D -> Dp.
    fcw3 = fc_w.reshape(d, c, p).transpose(2, 1, 0)                 # (P, C, D)
    fcw3 = jnp.zeros((p, c, dp), jnp.float32).at[:, :, :d].set(fcw3)

    # bn2 with the fc bias folded in; zero in the D padding so h_pad == 0.
    s2, t2 = _bn_fold(params["bn2_g"], params["bn2_b"],
                      params["bn2_m"], params["bn2_v"])
    s2p = jnp.zeros((1, dp), jnp.float32).at[0, :d].set(s2)
    b2p = jnp.zeros((1, dp), jnp.float32).at[0, :d].set(s2 * fc_b + t2)

    # Pre-transposed, zero-padded bf16 entity table (halves the dominant HBM
    # stream); f32 MXU accumulation happens inside kernel 2.
    # TODO(synk): on bandwidth-poor v5e an int8 table + per-entity scale folded
    # into the bias path would halve the table bytes again.
    ent_t = jnp.zeros((dp, n_pad), jnp.bfloat16).at[:d, :n_ent].set(
        emb_e.T.astype(jnp.bfloat16))
    bias = jnp.zeros((1, n_pad), jnp.float32).at[0, :n_ent].set(b_ent)

    return {
        "emb_e": emb_e, "emb_rel": emb_rel,
        "s0": s0, "t0": t0,
        "conv_w2": convw2, "s1": s1, "b1": b1f,
        "fc_w3": fcw3, "s2": s2p, "b2": b2p,
        "ent_t": ent_t, "bias": bias,
        "d1": d1, "d2": d2, "C": c, "P": p,
        "D": d, "Dp": dp, "n_ent": n_ent, "n_pad": n_pad, "tile_n": tile_n,
    }


# --------------------------------------------------------------------------
# Forward
# --------------------------------------------------------------------------
def conve_forward(e1, rel, prep):
    """ConvE forward pass.  e1, rel: (B,) int32 index tensors.
    For throughput, run with B = 64-128 (multiple of 8) so the full entity
    table read is amortized over many query rows."""
    emb_e, emb_rel = prep["emb_e"], prep["emb_rel"]
    d1, d2, C, P = prep["d1"], prep["d2"], prep["C"], prep["P"]
    D, Dp = prep["D"], prep["Dp"]
    n_ent, n_pad, tile_n = prep["n_ent"], prep["n_pad"], prep["tile_n"]
    B = e1.shape[0]
    assert B % 8 == 0, "batch must be a multiple of 8 (f32 sublane tile)"
    Hp, Wp = 2 * d1 - 2, d2 - 2

    # ---------------- plain-JAX glue (gather, bn0, im2col) ----------------
    e1_emb = emb_e[e1].reshape(B, 1, d1, d2)
    rel_emb = emb_rel[rel].reshape(B, 1, d1, d2)
    x = jnp.concatenate([e1_emb, rel_emb], axis=2)                  # (B,1,2d1,d2)
    x = x * prep["s0"] + prep["t0"]                                 # bn0 (eval)
    # TODO(synk): inp_drop / feature_map_drop / hidden_drop are identity at
    # inference; no dropout path (and no VJP / BCELoss) is implemented here.

    # im2col patches for the 3x3 VALID conv, rows grouped p-major (row = p*B+b),
    # tap dim zero-padded 9 -> 16.
    x2 = x[:, 0, :, :]                                              # (B, 2d1, d2)
    cols = [x2[:, kh:kh + Hp, kw:kw + Wp]
            for kh in range(3) for kw in range(3)]                  # 9 x (B,Hp,Wp)
    patches = jnp.stack(cols, axis=-1)                              # (B,Hp,Wp,9)
    patches = patches.transpose(1, 2, 0, 3).reshape(P * B, 9)       # (P*B, 9)
    patches = jnp.zeros((P * B, 16), jnp.float32).at[:, :9].set(patches)

    # ---------------- kernel 1: feature (B, Dp) bf16, single grid step ------
    h = pl.pallas_call(
        functools.partial(_feature_kernel, batch=B, n_pos=P),
        out_shape=jax.ShapeDtypeStruct((B, Dp), jnp.bfloat16),
        grid_spec=pltpu.PrefetchScalarGridSpec(
            num_scalar_prefetch=0,
            grid=(1,),
            in_specs=[
                pl.BlockSpec((P * B, 16), lambda i: (0, 0)),        # patches
                pl.BlockSpec((16, C), lambda i: (0, 0)),            # conv weight
                pl.BlockSpec((1, C), lambda i: (0, 0)),             # bn1 scale
                pl.BlockSpec((1, C), lambda i: (0, 0)),             # bn1 shift
                pl.BlockSpec((P, C, Dp), lambda i: (0, 0, 0)),      # fc weight
                pl.BlockSpec((1, Dp), lambda i: (0, 0)),            # bn2 scale
                pl.BlockSpec((1, Dp), lambda i: (0, 0)),            # bn2 shift
            ],
            out_specs=pl.BlockSpec((B, Dp), lambda i: (0, 0)),
            scratch_shapes=[pltpu.VMEM((P * B, C), jnp.float32),    # conv act
                            pltpu.VMEM((B, Dp), jnp.float32)],      # fc accum
        ),
        # Single reduction step; on v7x a leading "parallel" axis over B (or D
        # tiles) could use the second TensorCore if this stage shows up in a
        # profile.
        compiler_params=pltpu.CompilerParams(
            dimension_semantics=("arbitrary",)),
    )(patches, prep["conv_w2"], prep["s1"], prep["b1"], prep["fc_w3"],
      prep["s2"], prep["b2"])

    # ---------------- kernel 2: streamed entity scoring ----------------
    cost = pl.CostEstimate(
        flops=2 * B * n_pad * Dp,
        transcendentals=B * n_pad,
        bytes_accessed=Dp * n_pad * 2 + B * Dp * 2 + n_pad * 4 + B * n_pad * 4)

    # 2 streamed table bufs + 2 output bufs + bias bufs + resident h must fit
    # scoped VMEM (v5e 16 MiB / v6e 32 MiB / v7x 32 MiB scoped, 64 MiB phys).
    k2_vmem = (2 * Dp * tile_n * 2 + 2 * B * tile_n * 4
               + 2 * tile_n * 4 + B * Dp * 2)
    score_cp = dict(dimension_semantics=("parallel",))              # megacore
    if k2_vmem > 12 * 1024 * 1024:
        score_cp["vmem_limit_bytes"] = min(2 * k2_vmem, 64 * 1024 * 1024)

    pred = pl.pallas_call(
        _score_kernel,
        out_shape=jax.ShapeDtypeStruct((B, n_pad), jnp.float32),
        grid_spec=pltpu.PrefetchScalarGridSpec(
            num_scalar_prefetch=0,
            grid=(n_pad // tile_n,),
            in_specs=[
                pl.BlockSpec((B, Dp), lambda j: (0, 0)),            # resident h
                # Optionally add pipeline_mode=pl.Buffered(3) here if a profile
                # still shows DMA gaps after enlarging tile_n.
                pl.BlockSpec((Dp, tile_n), lambda j: (0, j)),       # table tile
                pl.BlockSpec((1, tile_n), lambda j: (0, j)),        # entity bias
            ],
            out_specs=pl.BlockSpec((B, tile_n), lambda j: (0, j)),
        ),
        compiler_params=pltpu.CompilerParams(**score_cp),
        cost_estimate=cost,
    )(h, prep["ent_t"], prep["bias"])

    # NOTE: padded entity columns hold sigmoid(0) = 0.5 before this slice;
    # never consume `pred` without it.
    return pred[:, :n_ent]


# --------------------------------------------------------------------------
# Pure-JAX reference (mirrors the torch forward, eval-mode BN, no dropout)
# --------------------------------------------------------------------------
def reference_forward(e1, rel, params, *, emb_dim1, score_dtype=jnp.float32):
    emb_e, emb_rel = params["emb_e"], params["emb_rel"]
    B = e1.shape[0]
    N_ent, D = emb_e.shape
    d1, d2 = emb_dim1, D // emb_dim1
    x = jnp.concatenate([emb_e[e1].reshape(B, 1, d1, d2),
                         emb_rel[rel].reshape(B, 1, d1, d2)], axis=2)
    s0, t0 = _bn_fold(params["bn0_g"], params["bn0_b"],
                      params["bn0_m"], params["bn0_v"])
    x = x * s0 + t0
    y = lax.conv_general_dilated(x, params["conv_w"], (1, 1), "VALID",
                                 dimension_numbers=("NCHW", "OIHW", "NCHW"))
    y = y + params["conv_b"][None, :, None, None]
    s1, t1 = _bn_fold(params["bn1_g"], params["bn1_b"],
                      params["bn1_m"], params["bn1_v"])
    y = jnp.maximum(y * s1[None, :, None, None] + t1[None, :, None, None], 0.0)
    z = y.reshape(B, -1) @ params["fc_w"].T + params["fc_b"]
    s2, t2 = _bn_fold(params["bn2_g"], params["bn2_b"],
                      params["bn2_m"], params["bn2_v"])
    z = jnp.maximum(z * s2 + t2, 0.0)
    logits = jnp.dot(z.astype(score_dtype), emb_e.T.astype(score_dtype),
                     preferred_element_type=jnp.float32) + params["b"]
    return jax.nn.sigmoid(logits)


if __name__ == "__main__":
    key = jax.random.PRNGKey(0)
    keys = jax.random.split(key, 20)

    num_entities = 300        # deliberately NOT a multiple of the tile width
    num_relations = 24
    embedding_dim = 32        # D (padded to 128 inside prepare_params)
    emb_dim1 = 8              # -> emb_dim2 = 4; stacked "image" is (16, 4)
    batch = 8                 # multiple of 8 (f32 sublane); use 64-128 in prod
    C = 32                    # conv output channels (fixed by the module)
    d2 = embedding_dim // emb_dim1
    hidden = C * (2 * emb_dim1 - 2) * (d2 - 2)

    def nrm(k, shape, scale):
        return scale * jax.random.normal(k, shape, jnp.float32)

    params = {
        # padding_idx=0 -> zero row 0 (as after xavier init in the module)
        "emb_e": nrm(keys[0], (num_entities, embedding_dim), 0.3).at[0].set(0.0),
        "emb_rel": nrm(keys[1], (num_relations, embedding_dim), 0.3).at[0].set(0.0),
        "conv_w": nrm(keys[2], (C, 1, 3, 3), 0.3),
        "conv_b": nrm(keys[3], (C,), 0.1),
        "fc_w": nrm(keys[4], (embedding_dim, hidden), 1.5 / hidden ** 0.5),
        "fc_b": nrm(keys[5], (embedding_dim,), 0.1),
        "b": nrm(keys[6], (num_entities,), 0.5),
        "bn0_g": 1.0 + nrm(keys[7], (1,), 0.1),
        "bn0_b": nrm(keys[8], (1,), 0.1),
        "bn0_m": nrm(keys[9], (1,), 0.1),
        "bn0_v": jax.random.uniform(keys[10], (1,), jnp.float32, 0.5, 1.5),
        "bn1_g": 1.0 + nrm(keys[11], (C,), 0.1),
        "bn1_b": nrm(keys[12], (C,), 0.1),
        "bn1_m": nrm(keys[13], (C,), 0.1),
        "bn1_v": jax.random.uniform(keys[14], (C,), jnp.float32, 0.5, 1.5),
        "bn2_g": 1.0 + nrm(keys[15], (embedding_dim,), 0.1),
        "bn2_b": nrm(keys[16], (embedding_dim,), 0.1),
        "bn2_m": nrm(keys[17], (embedding_dim,), 0.1),
        "bn2_v": jax.random.uniform(keys[18], (embedding_dim,), jnp.float32, 0.5, 1.5),
    }

    k_i1, k_i2 = jax.random.split(keys[19])
    e1 = jax.random.randint(k_i1, (batch,), 0, num_entities, jnp.int32)
    rel = jax.random.randint(k_i2, (batch,), 0, num_relations, jnp.int32)

    # One-time prep (hoisted out of the forward); tile_n=256 keeps a multi-step
    # streamed grid even on this tiny demo table (real tables: 2048-8192).
    prep = prepare_params(params, emb_dim1=emb_dim1, tile_n=256)

    pred = conve_forward(e1, rel, prep)
    pred = jax.block_until_ready(pred)
    assert pred.shape == (batch, num_entities)

    # Check against a reference using the same bf16 scoring policy, plus a
    # looser sanity check against the pure-f32 reference.
    ref_bf = reference_forward(e1, rel, params, emb_dim1=emb_dim1,
                               score_dtype=jnp.bfloat16)
    ref_f32 = reference_forward(e1, rel, params, emb_dim1=emb_dim1,
                                score_dtype=jnp.float32)
    assert jnp.allclose(pred, ref_bf, atol=1e-2, rtol=1e-2), \
        float(jnp.max(jnp.abs(pred - ref_bf)))
    assert jnp.allclose(pred, ref_f32, atol=5e-2, rtol=5e-2), \
        float(jnp.max(jnp.abs(pred - ref_f32)))

    print("KERNEL_OK")
</pallas_src>

<mosaic_0001>
module attributes {stable_mosaic.version = 11 : i64} {
  func.func @_feature_kernel(%arg0: i32, %arg1: memref<224x16xf32, #tpu.memory_space<vmem>>, %arg2: memref<16x32xf32, #tpu.memory_space<vmem>>, %arg3: memref<1x32xf32, #tpu.memory_space<vmem>>, %arg4: memref<1x32xf32, #tpu.memory_space<vmem>>, %arg5: memref<28x32x128xf32, #tpu.memory_space<vmem>>, %arg6: memref<1x128xf32, #tpu.memory_space<vmem>>, %arg7: memref<1x128xf32, #tpu.memory_space<vmem>>, %arg8: memref<8x128xbf16, #tpu.memory_space<vmem>>, %arg9: memref<224x32xf32, #tpu.memory_space<vmem>>, %arg10: memref<8x128xf32, #tpu.memory_space<vmem>>) attributes {dimension_semantics = [#tpu.dimension_semantics<arbitrary>], iteration_bounds = array<i64: 1>, scalar_prefetch = 0 : i64, scratch_operands = 2 : i64, tpu.core_type = #tpu.core_type<tc>, window_params = [{pipeline_mode = #tpu.pipeline_mode<synchronous>, transform_indices = @transform_0, window_bounds = array<i64: 224, 16>}, {pipeline_mode = #tpu.pipeline_mode<synchronous>, transform_indices = @transform_1, window_bounds = array<i64: 16, 32>}, {pipeline_mode = #tpu.pipeline_mode<synchronous>, transform_indices = @transform_2, window_bounds = array<i64: 1, 32>}, {pipeline_mode = #tpu.pipeline_mode<synchronous>, transform_indices = @transform_3, window_bounds = array<i64: 1, 32>}, {pipeline_mode = #tpu.pipeline_mode<synchronous>, transform_indices = @transform_4, window_bounds = array<i64: 28, 32, 128>}, {pipeline_mode = #tpu.pipeline_mode<synchronous>, transform_indices = @transform_5, window_bounds = array<i64: 1, 128>}, {pipeline_mode = #tpu.pipeline_mode<synchronous>, transform_indices = @transform_6, window_bounds = array<i64: 1, 128>}, {pipeline_mode = #tpu.pipeline_mode<synchronous>, transform_indices = @transform_7, window_bounds = array<i64: 8, 128>}]} {
    %c0 = arith.constant 0 : index
    %c0_0 = arith.constant 0 : index
    %0 = vector.load %arg1[%c0, %c0_0] : memref<224x16xf32, #tpu.memory_space<vmem>>, vector<224x16xf32>
    %c0_1 = arith.constant 0 : index
    %c0_2 = arith.constant 0 : index
    %1 = vector.load %arg2[%c0_1, %c0_2] : memref<16x32xf32, #tpu.memory_space<vmem>>, vector<16x32xf32>
    %cst = arith.constant dense<0.000000e+00> : vector<224x32xf32>
    %2 = tpu.matmul %0, %1, %cst {dimension_numbers = #tpu.dot_dimension_numbers<[1], [0], [0], [1], [0, 0, 1, 1], [], []>} : vector<224x16xf32>, vector<16x32xf32>, vector<224x32xf32> -> vector<224x32xf32>
    %c0_3 = arith.constant 0 : index
    %c0_4 = arith.constant 0 : index
    %3 = vector.load %arg3[%c0_3, %c0_4] : memref<1x32xf32, #tpu.memory_space<vmem>>, vector<1x32xf32>
    %4 = vector.broadcast %3 : vector<1x32xf32> to vector<224x32xf32>
    %5 = arith.mulf %2, %4 : vector<224x32xf32>
    %c0_5 = arith.constant 0 : index
    %c0_6 = arith.constant 0 : index
    %6 = vector.load %arg4[%c0_5, %c0_6] : memref<1x32xf32, #tpu.memory_space<vmem>>, vector<1x32xf32>
    %7 = vector.broadcast %6 : vector<1x32xf32> to vector<224x32xf32>
    %8 = arith.addf %5, %7 : vector<224x32xf32>
    %cst_7 = arith.constant 0.000000e+00 : f32
    %9 = vector.broadcast %cst_7 : f32 to vector<224x32xf32>
    %10 = arith.maximumf %8, %9 : vector<224x32xf32>
    %c0_8 = arith.constant 0 : index
    %c0_9 = arith.constant 0 : index
    %11 = vector.load %arg9[%c0_8, %c0_9] : memref<224x32xf32, #tpu.memory_space<vmem>>, vector<224x32xf32>
    tpu.vector_store %arg9[%c0_8, %c0_9], %10 {strides = array<i32>} : memref<224x32xf32, #tpu.memory_space<vmem>>, vector<224x32xf32>,
    %cst_10 = arith.constant 0.000000e+00 : f32
    %12 = vector.broadcast %cst_10 : f32 to vector<8x128xf32>
    %c0_11 = arith.constant 0 : index
    %c0_12 = arith.constant 0 : index
    %13 = vector.load %arg10[%c0_11, %c0_12] : memref<8x128xf32, #tpu.memory_space<vmem>>, vector<8x128xf32>
    tpu.vector_store %arg10[%c0_11, %c0_12], %12 {strides = array<i32>} : memref<8x128xf32, #tpu.memory_space<vmem>>, vector<8x128xf32>,
    %c0_i32 = arith.constant 0 : i32
    %c28_i32 = arith.constant 28 : i32
    %14 = arith.addi %c0_i32, %c28_i32 : i32
    %c1_i32 = arith.constant 1 : i32
    scf.for %arg11 = %c0_i32 to %14 step %c1_i32  : i32 {
      %c8_i32 = arith.constant 8 : i32
      %26 = arith.muli %arg11, %c8_i32 : i32
      %27 = tpu.assume_multiple %26, 8 : i32
      %28 = arith.index_cast %27 : i32 to index
      %c0_23 = arith.constant 0 : index
      %29 = vector.load %arg9[%28, %c0_23] : memref<224x32xf32, #tpu.memory_space<vmem>>, vector<8x32xf32>
      %c0_24 = arith.constant 0 : index
      %c0_25 = arith.constant 0 : index
      %30 = vector.load %arg10[%c0_24, %c0_25] : memref<8x128xf32, #tpu.memory_space<vmem>>, vector<8x128xf32>
      %31 = arith.index_cast %arg11 : i32 to index
      %c0_26 = arith.constant 0 : index
      %c0_27 = arith.constant 0 : index
      %32 = vector.load %arg5[%31, %c0_26, %c0_27] : memref<28x32x128xf32, #tpu.memory_space<vmem>>, vector<1x32x128xf32>
      %33 = vector.shape_cast %32 : vector<1x32x128xf32> to vector<32x128xf32>
      %cst_28 = arith.constant dense<0.000000e+00> : vector<8x128xf32>
      %34 = tpu.matmul %29, %33, %cst_28 {dimension_numbers = #tpu.dot_dimension_numbers<[1], [0], [0], [1], [0, 0, 1, 1], [], []>} : vector<8x32xf32>, vector<32x128xf32>, vector<8x128xf32> -> vector<8x128xf32>
      %35 = arith.addf %30, %34 : vector<8x128xf32>
      %c0_29 = arith.constant 0 : index
      %c0_30 = arith.constant 0 : index
      %36 = vector.load %arg10[%c0_29, %c0_30] : memref<8x128xf32, #tpu.memory_space<vmem>>, vector<8x128xf32>
      tpu.vector_store %arg10[%c0_29, %c0_30], %35 {strides = array<i32>} : memref<8x128xf32, #tpu.memory_space<vmem>>, vector<8x128xf32>,
    }
    %c28_i32_13 = arith.constant 28 : i32
    %c0_14 = arith.constant 0 : index
    %c0_15 = arith.constant 0 : index
    %15 = vector.load %arg10[%c0_14, %c0_15] : memref<8x128xf32, #tpu.memory_space<vmem>>, vector<8x128xf32>
    %c0_16 = arith.constant 0 : index
    %c0_17 = arith.constant 0 : index
    %16 = vector.load %arg6[%c0_16, %c0_17] : memref<1x128xf32, #tpu.memory_space<vmem>>, vector<1x128xf32>
    %17 = vector.broadcast %16 : vector<1x128xf32> to vector<8x128xf32>
    %18 = arith.mulf %15, %17 : vector<8x128xf32>
    %c0_18 = arith.constant 0 : index
    %c0_19 = arith.constant 0 : index
    %19 = vector.load %arg7[%c0_18, %c0_19] : memref<1x128xf32, #tpu.memory_space<vmem>>, vector<1x128xf32>
    %20 = vector.broadcast %19 : vector<1x128xf32> to vector<8x128xf32>
    %21 = arith.addf %18, %20 : vector<8x128xf32>
    %cst_20 = arith.constant 0.000000e+00 : f32
    %22 = vector.broadcast %cst_20 : f32 to vector<8x128xf32>
    %23 = arith.maximumf %21, %22 : vector<8x128xf32>
    %24 = arith.truncf %23 : vector<8x128xf32> to vector<8x128xbf16>
    %c0_21 = arith.constant 0 : index
    %c0_22 = arith.constant 0 : index
    %25 = vector.load %arg8[%c0_21, %c0_22] : memref<8x128xbf16, #tpu.memory_space<vmem>>, vector<8x128xbf16>
    tpu.vector_store %arg8[%c0_21, %c0_22], %24 {strides = array<i32>} : memref<8x128xbf16, #tpu.memory_space<vmem>>, vector<8x128xbf16>,
    return
  }
  func.func @transform_0(%arg0: i32) -> (i32, i32) {
    %c0_i32 = arith.constant 0 : i32
    %c0_i32_0 = arith.constant 0 : i32
    %c0_i32_1 = arith.constant 0 : i32
    return %c0_i32, %c0_i32_0 : i32, i32
  }
  func.func @transform_1(%arg0: i32) -> (i32, i32) {
    %c0_i32 = arith.constant 0 : i32
    %c0_i32_0 = arith.constant 0 : i32
    %c0_i32_1 = arith.constant 0 : i32
    return %c0_i32, %c0_i32_0 : i32, i32
  }
  func.func @transform_2(%arg0: i32) -> (i32, i32) {
    %c0_i32 = arith.constant 0 : i32
    %c0_i32_0 = arith.constant 0 : i32
    %c0_i32_1 = arith.constant 0 : i32
    return %c0_i32, %c0_i32_0 : i32, i32
  }
  func.func @transform_3(%arg0: i32) -> (i32, i32) {
    %c0_i32 = arith.constant 0 : i32
    %c0_i32_0 = arith.constant 0 : i32
    %c0_i32_1 = arith.constant 0 : i32
    return %c0_i32, %c0_i32_0 : i32, i32
  }
  func.func @transform_4(%arg0: i32) -> (i32, i32, i32) {
    %c0_i32 = arith.constant 0 : i32
    %c0_i32_0 = arith.constant 0 : i32
    %c0_i32_1 = arith.constant 0 : i32
    %c0_i32_2 = arith.constant 0 : i32
    return %c0_i32, %c0_i32_0, %c0_i32_1 : i32, i32, i32
  }
  func.func @transform_5(%arg0: i32) -> (i32, i32) {
    %c0_i32 = arith.constant 0 : i32
    %c0_i32_0 = arith.constant 0 : i32
    %c0_i32_1 = arith.constant 0 : i32
    return %c0_i32, %c0_i32_0 : i32, i32
  }
  func.func @transform_6(%arg0: i32) -> (i32, i32) {
    %c0_i32 = arith.constant 0 : i32
    %c0_i32_0 = arith.constant 0 : i32
    %c0_i32_1 = arith.constant 0 : i32
    return %c0_i32, %c0_i32_0 : i32, i32
  }
  func.func @transform_7(%arg0: i32) -> (i32, i32) {
    %c0_i32 = arith.constant 0 : i32
    %c0_i32_0 = arith.constant 0 : i32
    %c0_i32_1 = arith.constant 0 : i32
    return %c0_i32, %c0_i32_0 : i32, i32
  }
}

</mosaic_0001>

<bundles_post_ra>
// kernel: tpu_custom_call.1
= control target key start
LH: loop header
LB: loop body
LE: loop exit
PB: predicated region body
PF: predicated region fallthrough
CT: control target
= control target key end

     0   :  { %12 = vsyncpa [#allocation5], 0  ;;  %s1104_s0 = inlined_call_operand.vmem [shape: f32[224,16], index: 0, kind: input, shape index: {}]   ;;  %s1105_s1 = inlined_call_operand.vmem [shape: f32[16,32], index: 1, kind: input, shape index: {}]   ;;  %s1106_s2 = inlined_call_operand.vmem [shape: f32[1,32], index: 2, kind: input, shape index: {}]   ;;  %s1107_s3 = inlined_call_operand.vmem [shape: f32[1,32], index: 3, kind: input, shape index: {}]   ;;  %s1108_s4 = inlined_call_operand.hbm [shape: f32[28,32,128], index: 4, kind: input, shape index: {}]   ;;  %s1109_s5 = inlined_call_operand.vmem [shape: f32[1,128], index: 5, kind: input, shape index: {}]   ;;  %s1110_s6 = inlined_call_operand.vmem [shape: f32[1,128], index: 6, kind: input, shape index: {}]   ;;  %s1111_s7 = inlined_call_operand.hbm [shape: bf16[8,128], index: 7, kind: output, shape index: {}]  }
   0x1   :  { %13 = vsyncpa [#allocation6], 0  ;;  %s822_s24 = smov [#allocation4]  }
   0x2   :  { %s27_s25 = sshll.u32 %s822_s24, 4  ;;  %s28_s25 = int_to_ptr.vmem [resolvable:$true] %s27_s25 }
   0x3   :  { %s778_s26 = scalar_lea.vmem %s28_s25, 14336  ;;  %p783_p1 = scmp.lt.s32.totalorder %s28_s25, %s28_s25 }
   0x4   :  { %p779_p0 = scmp.ne.s32.totalorder %s28_s25, %s778_s26  ;;  %p784_p2 = scmp.lt.s32.totalorder %s778_s26, %s778_s26 }
   0x6   :  { %p785_p3 = por %p784_p2, %p783_p1 }
   0x8   :  { %p786_p4 = pnand %p785_p3, %p779_p0 }
   0xa   :  { %789 = shalt.err (!%p786_p4)
}
   0xb   :  { %s823_s27 = smov 128   ;;  %s824_s28 = smov 8  }
   0xc   :  { %33 = dma.hbm_to_vmem [thread:$0]  %s1108_s4, 14336, %s28_s25, [#allocation5], %s823_s27, %s823_s27, %s824_s28  }
   0xd   :  { %814 = dma.done.wait [#allocation5], 14336  }
   0xe   :  { %815 = vsyncadd [#allocation5], 4294952960  ;;  %v825_v0 = vmov 0.0   ;;  %v70_v1 = vld [vmem:[%s1105_s1 + $0x8] sm:$0xff]  ;;  %v69_v2 = vld [vmem:[%s1105_s1] sm:$0xff]  ;;  %vm71_vm0 = vcmask 130048  }
   0xf   :  { %488 = vst [vmem:[#allocation3] sm:$0xff] %v825_v0  ;;  %694 = vmatprep.subr.mxu0 %v70_v1  ;;  %751 = vmatprep.subr.mxu1 %v70_v1  ;;  %v41_v3 = vld [vmem:[%s1104_s0] sm:$0xff]  ;;  %v55_v4 = vld [vmem:[%s1104_s0 + $0x70] sm:$0xff]  ;;  %v42_v5 = vld [vmem:[%s1104_s0 + $0x8] sm:$0xff]  ;;  %vm459_vm1 = vcmask 261120  }
  0x10   :  { %695 = vmatpush3.msra.mxu0 %v70_v1  ;;  %753 = vmatpush3.msra.mxu1 %v70_v1  ;;  %v56_v6 = vld [vmem:[%s1104_s0 + $0x78] sm:$0xff]  ;;  %v43_v7 = vld [vmem:[%s1104_s0 + $0x10] sm:$0xff]  ;;  %v57_v8 = vld [vmem:[%s1104_s0 + $0x80] sm:$0xff] }
  0x11   :  { %696 = vmatprep.subr.mxu0 %v69_v2  ;;  %752 = vmatprep.subr.mxu1 %v69_v2  ;;  %v44_v9 = vld [vmem:[%s1104_s0 + $0x18] sm:$0xff]  ;;  %v58_v10 = vld [vmem:[%s1104_s0 + $0x88] sm:$0xff]  ;;  %v45_v11 = vld [vmem:[%s1104_s0 + $0x20] sm:$0xff] }
  0x12   :  { %697 = vmatpush3.msra.mxu0 %v69_v2  ;;  %754 = vmatpush3.msra.mxu1 %v69_v2  ;;  %v59_v12 = vld [vmem:[%s1104_s0 + $0x90] sm:$0xff]  ;;  %v46_v13 = vld [vmem:[%s1104_s0 + $0x28] sm:$0xff]  ;;  %v60_v14 = vld [vmem:[%s1104_s0 + $0x98] sm:$0xff] }
  0x13   :  { %698 = vmatprep.mubr.msk.f32.mxu0 %vm71_vm0, %v41_v3  ;;  %719 = vmatprep.mubr.msk.f32.mxu1 %vm71_vm0, %v55_v4  ;;  %v47_v15 = vld [vmem:[%s1104_s0 + $0x30] sm:$0xff]  ;;  %v61_v16 = vld [vmem:[%s1104_s0 + $0xa0] sm:$0xff]  ;;  %v48_v17 = vld [vmem:[%s1104_s0 + $0x38] sm:$0xff] }
  0x14   :  { %699 = vmatmul.mubr.msk.f32.vlgmr.msra.gmra.mxu0 %vm71_vm0, %v42_v5  ;;  %720 = vmatmul.mubr.msk.f32.vlgmr.msra.gmra.mxu1 %vm71_vm0, %v56_v6  ;;  %v62_v18 = vld [vmem:[%s1104_s0 + $0xa8] sm:$0xff]  ;;  %v49_v19 = vld [vmem:[%s1104_s0 + $0x40] sm:$0xff]  ;;  %v63_v20 = vld [vmem:[%s1104_s0 + $0xb0] sm:$0xff] }
  0x15   :  { %701 = vmatprep.mubr.msk.f32.mxu0 %vm71_vm0, %v43_v7  ;;  %722 = vmatprep.mubr.msk.f32.mxu1 %vm71_vm0, %v57_v8  ;;  %v50_v21 = vld [vmem:[%s1104_s0 + $0x48] sm:$0xff]  ;;  %v64_v22 = vld [vmem:[%s1104_s0 + $0xb8] sm:$0xff]  ;;  %v51_v23 = vld [vmem:[%s1104_s0 + $0x50] sm:$0xff] }
  0x16   :  { %v65_v24 = vld [vmem:[%s1104_s0 + $0xc0] sm:$0xff]  ;;  %v52_v25 = vld [vmem:[%s1104_s0 + $0x58] sm:$0xff]  ;;  %v66_v26 = vld [vmem:[%s1104_s0 + $0xc8] sm:$0xff] }
  0x17   :  { %v53_v27 = vld [vmem:[%s1104_s0 + $0x60] sm:$0xff]  ;;  %v67_v28 = vld [vmem:[%s1104_s0 + $0xd0] sm:$0xff]  ;;  %v54_v29 = vld [vmem:[%s1104_s0 + $0x68] sm:$0xff] }
  0x18   :  { %702 = vmatmul.mubr.msk.f32.gmra.mxu0 %vm71_vm0, %v44_v9  ;;  %723 = vmatmul.mubr.msk.f32.gmra.mxu1 %vm71_vm0, %v58_v10  ;;  %v68_v30 = vld [vmem:[%s1104_s0 + $0xd8] sm:$0xff]  ;;  %v993_v31 = vld [vmem:[%s1106_s2] ss:$0 sm:$0xff]  ;;  %s1084_s0 = smov 0  }
  0x19   :  { %704 = vmatprep.mubr.msk.f32.mxu0 %vm71_vm0, %v45_v11  ;;  %725 = vmatprep.mubr.msk.f32.mxu1 %vm71_vm0, %v59_v12  ;;  %v998_v33 = vld [vmem:[%s1107_s3] ss:$0 sm:$0xff] }
  0x1c   :  { %705 = vmatmul.mubr.msk.f32.gmra.mxu0 %vm71_vm0, %v46_v13  ;;  %726 = vmatmul.mubr.msk.f32.gmra.mxu1 %vm71_vm0, %v60_v14 }
  0x1d   :  { %707 = vmatprep.mubr.msk.f32.mxu0 %vm71_vm0, %v47_v15  ;;  %728 = vmatprep.mubr.msk.f32.mxu1 %vm71_vm0, %v61_v16 }
  0x20   :  { %708 = vmatmul.mubr.msk.f32.gmra.mxu0 %vm71_vm0, %v48_v17  ;;  %729 = vmatmul.mubr.msk.f32.gmra.mxu1 %vm71_vm0, %v62_v18 }
  0x21   :  { %710 = vmatprep.mubr.msk.f32.mxu0 %vm71_vm0, %v49_v19  ;;  %731 = vmatprep.mubr.msk.f32.mxu1 %vm71_vm0, %v63_v20 }
  0x24   :  { %711 = vmatmul.mubr.msk.f32.gmra.mxu0 %vm71_vm0, %v50_v21  ;;  %732 = vmatmul.mubr.msk.f32.gmra.mxu1 %vm71_vm0, %v64_v22 }
  0x25   :  { %713 = vmatprep.mubr.msk.f32.mxu0 %vm71_vm0, %v51_v23  ;;  %734 = vmatprep.mubr.msk.f32.mxu1 %vm71_vm0, %v65_v24 }
  0x28   :  { %714 = vmatmul.mubr.msk.f32.gmra.mxu0 %vm71_vm0, %v52_v25  ;;  %735 = vmatmul.mubr.msk.f32.gmra.mxu1 %vm71_vm0, %v66_v26 }
  0x29   :  { %716 = vmatprep.mubr.msk.f32.mxu0 %vm71_vm0, %v53_v27  ;;  %737 = vmatprep.mubr.msk.f32.mxu1 %vm71_vm0, %v67_v28 }
  0x2c   :  { %717 = vmatmul.mubr.msk.f32.gmra.mxu0 %vm71_vm0, %v54_v29  ;;  %738 = vmatmul.mubr.msk.f32.gmra.mxu1 %vm71_vm0, %v68_v30 }
  0xd4   :  { %v700_v32 = vpop.f32.mrf.mxu0  ;;  %v721_v34 = vpop.f32.mrf.mxu1 }
  0xd5   :  { %v369_v35 = vmul.f32 %v700_v32, %v993_v31  ;;  %v383_v36 = vmul.f32 %v721_v34, %v993_v31 }
  0xd6   :  { %v222_v37 = vpop.f32.mrf.mxu0  ;;  %v292_v38 = vpop.f32.mrf.mxu1 }
  0xd7   :  { %v404_v39 = vadd.f32 %v998_v33, %v369_v35  ;;  %v418_v40 = vadd.f32 %v998_v33, %v383_v36  ;;  %v368_v41 = vmul.f32 %v993_v31, %v222_v37  ;;  %v382_v42 = vmul.f32 %v993_v31, %v292_v38 }
  0xd8   :  { %v703_v43 = vpop.f32.mrf.mxu0  ;;  %v724_v44 = vpop.f32.mrf.mxu1 }
  0xd9   :  { %v432_v45 = vmax.f32 %v404_v39, 0.0  ;;  %v446_v46 = vmax.f32 %v418_v40, 0.0  ;;  %v403_v47 = vadd.f32 %v998_v33, %v368_v41  ;;  %v417_v48 = vadd.f32 %v998_v33, %v382_v42 }
  0xda   :  { %v371_v49 = vmul.f32 %v703_v43, %v993_v31  ;;  %v385_v50 = vmul.f32 %v724_v44, %v993_v31  ;;  %v232_v51 = vpop.f32.mrf.mxu0  ;;  %v302_v52 = vpop.f32.mrf.mxu1 }
  0xdb   :  { %461 = vst.msk [vmem:[#allocation2 + $0x8] sm:$0xff] %vm459_vm1, %v432_v45  ;;  %475 = vst.msk [vmem:[#allocation2 + $0x78] sm:$0xff] %vm459_vm1, %v446_v46  ;;  %v431_v53 = vmax.f32 %v403_v47, 0.0  ;;  %v445_v54 = vmax.f32 %v417_v48, 0.0  ;;  %v370_v55 = vmul.f32 %v993_v31, %v232_v51  ;;  %v384_v56 = vmul.f32 %v993_v31, %v302_v52 }
  0xdc   :  { %v406_v57 = vadd.f32 %v998_v33, %v371_v49  ;;  %v420_v58 = vadd.f32 %v998_v33, %v385_v50  ;;  %v706_v59 = vpop.f32.mrf.mxu0  ;;  %v727_v60 = vpop.f32.mrf.mxu1 }
  0xdd   :  { %460 = vst.msk [vmem:[#allocation2] sm:$0xff] %vm459_vm1, %v431_v53  ;;  %474 = vst.msk [vmem:[#allocation2 + $0x70] sm:$0xff] %vm459_vm1, %v445_v54  ;;  %v405_v61 = vadd.f32 %v998_v33, %v370_v55  ;;  %v419_v62 = vadd.f32 %v998_v33, %v384_v56  ;;  %v373_v63 = vmul.f32 %v706_v59, %v993_v31 }
  0xde   :  { %v387_v0 = vmul.f32 %v727_v60, %v993_v31  ;;  %v434_v1 = vmax.f32 %v406_v57, 0.0  ;;  %v448_v2 = vmax.f32 %v420_v58, 0.0  ;;  %v242_v3 = vpop.f32.mrf.mxu0  ;;  %v312_v4 = vpop.f32.mrf.mxu1 }
  0xdf   :  { %v433_v5 = vmax.f32 %v405_v61, 0.0  ;;  %v447_v6 = vmax.f32 %v419_v62, 0.0  ;;  %v408_v7 = vadd.f32 %v998_v33, %v373_v63  ;;  %v372_v9 = vmul.f32 %v993_v31, %v242_v3 }
  0xe0   :  { %v422_v8 = vadd.f32 %v998_v33, %v387_v0  ;;  %463 = vst.msk [vmem:[#allocation2 + $0x18] sm:$0xff] %vm459_vm1, %v434_v1  ;;  %477 = vst.msk [vmem:[#allocation2 + $0x88] sm:$0xff] %vm459_vm1, %v448_v2  ;;  %v386_v10 = vmul.f32 %v993_v31, %v312_v4  ;;  %v709_v11 = vpop.f32.mrf.mxu0  ;;  %v730_v12 = vpop.f32.mrf.mxu1 }
  0xe1   :  { %462 = vst.msk [vmem:[#allocation2 + $0x10] sm:$0xff] %vm459_vm1, %v433_v5  ;;  %476 = vst.msk [vmem:[#allocation2 + $0x80] sm:$0xff] %vm459_vm1, %v447_v6  ;;  %v436_v13 = vmax.f32 %v408_v7, 0.0  ;;  %v375_v15 = vmul.f32 %v709_v11, %v993_v31  ;;  %v389_v16 = vmul.f32 %v730_v12, %v993_v31  ;;  %v407_v17 = vadd.f32 %v998_v33, %v372_v9 }
  0xe2   :  { %v450_v14 = vmax.f32 %v422_v8, 0.0  ;;  %v421_v18 = vadd.f32 %v998_v33, %v386_v10  ;;  %v252_v19 = vpop.f32.mrf.mxu0  ;;  %v322_v20 = vpop.f32.mrf.mxu1 }
  0xe3   :  { %465 = vst.msk [vmem:[#allocation2 + $0x28] sm:$0xff] %vm459_vm1, %v436_v13  ;;  %v410_v21 = vadd.f32 %v998_v33, %v375_v15  ;;  %v424_v22 = vadd.f32 %v998_v33, %v389_v16  ;;  %v374_v23 = vmul.f32 %v993_v31, %v252_v19  ;;  %v388_v24 = vmul.f32 %v993_v31, %v322_v20 }
  0xe4   :  { %479 = vst.msk [vmem:[#allocation2 + $0x98] sm:$0xff] %vm459_vm1, %v450_v14  ;;  %v435_v25 = vmax.f32 %v407_v17, 0.0  ;;  %v449_v26 = vmax.f32 %v421_v18, 0.0  ;;  %v712_v27 = vpop.f32.mrf.mxu0  ;;  %v733_v28 = vpop.f32.mrf.mxu1 }
  0xe5   :  { %v438_v29 = vmax.f32 %v410_v21, 0.0  ;;  %v452_v30 = vmax.f32 %v424_v22, 0.0  ;;  %v409_v32 = vadd.f32 %v998_v33, %v374_v23  ;;  %v423_v34 = vadd.f32 %v998_v33, %v388_v24 }
  0xe6   :  { %464 = vst.msk [vmem:[#allocation2 + $0x20] sm:$0xff] %vm459_vm1, %v435_v25  ;;  %478 = vst.msk [vmem:[#allocation2 + $0x90] sm:$0xff] %vm459_vm1, %v449_v26  ;;  %v377_v35 = vmul.f32 %v712_v27, %v993_v31  ;;  %v391_v36 = vmul.f32 %v733_v28, %v993_v31  ;;  %v262_v37 = vpop.f32.mrf.mxu0  ;;  %v332_v38 = vpop.f32.mrf.mxu1 }
  0xe7   :  { %467 = vst.msk [vmem:[#allocation2 + $0x38] sm:$0xff] %vm459_vm1, %v438_v29  ;;  %481 = vst.msk [vmem:[#allocation2 + $0xa8] sm:$0xff] %vm459_vm1, %v452_v30  ;;  %v437_v39 = vmax.f32 %v409_v32, 0.0  ;;  %v451_v40 = vmax.f32 %v423_v34, 0.0  ;;  %v376_v41 = vmul.f32 %v993_v31, %v262_v37  ;;  %v390_v42 = vmul.f32 %v993_v31, %v332_v38 }
  0xe8   :  { %v412_v43 = vadd.f32 %v998_v33, %v377_v35  ;;  %v426_v44 = vadd.f32 %v998_v33, %v391_v36  ;;  %v715_v45 = vpop.f32.mrf.mxu0  ;;  %v736_v46 = vpop.f32.mrf.mxu1 }
  0xe9   :  { %466 = vst.msk [vmem:[#allocation2 + $0x30] sm:$0xff] %vm459_vm1, %v437_v39  ;;  %480 = vst.msk [vmem:[#allocation2 + $0xa0] sm:$0xff] %vm459_vm1, %v451_v40  ;;  %v411_v47 = vadd.f32 %v998_v33, %v376_v41  ;;  %v425_v48 = vadd.f32 %v998_v33, %v390_v42  ;;  %v379_v49 = vmul.f32 %v715_v45, %v993_v31 }
  0xea   :  { %v393_v50 = vmul.f32 %v736_v46, %v993_v31  ;;  %v440_v51 = vmax.f32 %v412_v43, 0.0  ;;  %v454_v52 = vmax.f32 %v426_v44, 0.0  ;;  %v272_v53 = vpop.f32.mrf.mxu0  ;;  %v342_v54 = vpop.f32.mrf.mxu1 }
  0xeb   :  { %v439_v55 = vmax.f32 %v411_v47, 0.0  ;;  %v453_v56 = vmax.f32 %v425_v48, 0.0  ;;  %v414_v57 = vadd.f32 %v998_v33, %v379_v49  ;;  %v378_v59 = vmul.f32 %v993_v31, %v272_v53 }
  0xec   :  { %v428_v58 = vadd.f32 %v998_v33, %v393_v50  ;;  %469 = vst.msk [vmem:[#allocation2 + $0x48] sm:$0xff] %vm459_vm1, %v440_v51  ;;  %483 = vst.msk [vmem:[#allocation2 + $0xb8] sm:$0xff] %vm459_vm1, %v454_v52  ;;  %v392_v60 = vmul.f32 %v993_v31, %v342_v54  ;;  %v718_v61 = vpop.f32.mrf.mxu0  ;;  %v739_v62 = vpop.f32.mrf.mxu1 }
  0xed   :  { %468 = vst.msk [vmem:[#allocation2 + $0x40] sm:$0xff] %vm459_vm1, %v439_v55  ;;  %482 = vst.msk [vmem:[#allocation2 + $0xb0] sm:$0xff] %vm459_vm1, %v453_v56  ;;  %v442_v63 = vmax.f32 %v414_v57, 0.0  ;;  %v381_v1 = vmul.f32 %v718_v61, %v993_v31  ;;  %v395_v2 = vmul.f32 %v739_v62, %v993_v31  ;;  %v413_v3 = vadd.f32 %v998_v33, %v378_v59 }
  0xee   :  { %v456_v0 = vmax.f32 %v428_v58, 0.0  ;;  %v427_v4 = vadd.f32 %v998_v33, %v392_v60  ;;  %v282_v5 = vpop.f32.mrf.mxu0  ;;  %v352_v6 = vpop.f32.mrf.mxu1 }
  0xef   :  { %471 = vst.msk [vmem:[#allocation2 + $0x58] sm:$0xff] %vm459_vm1, %v442_v63  ;;  %v416_v7 = vadd.f32 %v998_v33, %v381_v1  ;;  %v430_v8 = vadd.f32 %v998_v33, %v395_v2  ;;  %v380_v9 = vmul.f32 %v993_v31, %v282_v5  ;;  %v394_v10 = vmul.f32 %v993_v31, %v352_v6 }
  0xf0   :  { %485 = vst.msk [vmem:[#allocation2 + $0xc8] sm:$0xff] %vm459_vm1, %v456_v0  ;;  %v441_v11 = vmax.f32 %v413_v3, 0.0  ;;  %v455_v12 = vmax.f32 %v427_v4, 0.0 }
  0xf1   :  { %v444_v13 = vmax.f32 %v416_v7, 0.0  ;;  %v458_v14 = vmax.f32 %v430_v8, 0.0  ;;  %v415_v15 = vadd.f32 %v998_v33, %v380_v9  ;;  %v429_v16 = vadd.f32 %v998_v33, %v394_v10 }
  0xf2   :  { %470 = vst.msk [vmem:[#allocation2 + $0x50] sm:$0xff] %vm459_vm1, %v441_v11  ;;  %484 = vst.msk [vmem:[#allocation2 + $0xc0] sm:$0xff] %vm459_vm1, %v455_v12 }
  0xf3   :  { %473 = vst.msk [vmem:[#allocation2 + $0x68] sm:$0xff] %vm459_vm1, %v444_v13  ;;  %487 = vst.msk [vmem:[#allocation2 + $0xd8] sm:$0xff] %vm459_vm1, %v458_v14  ;;  %v443_v17 = vmax.f32 %v415_v15, 0.0  ;;  %v457_v18 = vmax.f32 %v429_v16, 0.0 }
  0xf5   :  { %472 = vst.msk [vmem:[#allocation2 + $0x60] sm:$0xff] %vm459_vm1, %v443_v17  ;;  %486 = vst.msk [vmem:[#allocation2 + $0xd0] sm:$0xff] %vm459_vm1, %v457_v18 }
  0xf6 LB: > { %v826_v31 = vmov 0.0   ;;  %vm827_vm2 = vmmov 0   ;;  %s655_s2 = sshll.u32 %s820_s0, 5  ;;  %s654_s3 = sshll.u32 %s820_s0, 3  ;;  %v498_v23 = vld [vmem:[#allocation3] sm:$0xff]  ;;  %s820_s0 = sphi %s1084_s0, %s494_s0  }
  0xf7   : > { %740 = vmatprep.subr.mxu0 %v826_v31  ;;  %748 = vmatprep.mubr.msk.f32.mxu0 %vm827_vm2, %v826_v31  ;;  %s500_s20 = scalar_lea.vmem [#allocation4], %s655_s2  ;;  %s496_s21 = scalar_lea.vmem [#allocation2], %s654_s3 }
  0xf8   : > { %v504_v33 = vld [vmem:[%s500_s20 + $0x18] sm:$0xff]  ;;  %v503_v19 = vld [vmem:[%s500_s20 + $0x10] sm:$0xff]  ;;  %v502_v20 = vld [vmem:[%s500_s20 + $0x8] sm:$0xff]  ;;  %s494_s0 = sadd.s32 1, %s820_s0  }
  0xf9   : > { %741 = vmatpush3.msra.mxu0 %v504_v33  ;;  %v501_v21 = vld [vmem:[%s500_s20] sm:$0xff]  ;;  %p491_p5 = scmp.ge.s32.totalorder %s494_s0, 28  }
  0xfa   : > { %742 = vmatprep.subr.mxu0 %v826_v31  ;;  %v657_v28 = vld [vmem:[%s1109_s5] ss:$0 sm:$0xff] (%p491_p5)  ;;  %s828_s26 = smov (%p491_p5), [#allocation7]  }
  0xfb   : > { %743 = vmatpush3.msra.mxu0 %v503_v19  ;;  %v658_v29 = vld [vmem:[%s1110_s6] ss:$0 sm:$0xff] (%p491_p5)  ;;  %s606_s27 = sshll.u32 (%p491_p5), %s828_s26, 4  ;;  %s607_s27 = int_to_ptr.vmem [resolvable:$true] %s606_s27 }
  0xfc   : > { %744 = vmatprep.subr.mxu0 %v826_v31  ;;  %v497_v22 = vld [vmem:[%s496_s21] sm:$0xff]  ;;  %s790_s28 = scalar_lea.vmem (%p491_p5), %s607_s27, 64  ;;  %p795_p7 = scmp.lt.s32.totalorder (%p491_p5), %s607_s27, %s607_s27 }
  0xfd   : > { %745 = vmatpush3.msra.mxu0 %v502_v20  ;;  %p791_p6 = scmp.ne.s32.totalorder (%p491_p5), %s607_s27, %s790_s28  ;;  %p796_p8 = scmp.lt.s32.totalorder (%p491_p5), %s790_s28, %s790_s28 }
  0xfe   : > { %746 = vmatprep.subr.mxu0 %v826_v31 }
  0xff   : > { %747 = vmatpush3.msra.mxu0 %v501_v21  ;;  %p797_p9 = por (%p491_p5), %p796_p8, %p795_p7 }
 0x100   : > { %749 = vmatmul.mubr.msk.f32.vlgmr.msra.gmra.mxu0 %vm459_vm1, %v497_v22 }
 0x101   :  { %p798_p10 = pnand (%p491_p5), %p797_p9, %p791_p6 }
 0x1bf   :  { %493 = sbr.rel (!%p491_p5) target bundleno = 246 (0xf6), region = 61 }
 0x1c0   : > { %v574_v24 = vpop.f32.mrf.mxu0 }
 0x1c1   : > { %v578_v25 = vadd.f32 %v574_v24, %v498_v23 }
 0x1c2   : > { %v750_v26 = vpop.f32.mrf.mxu0 }
 0x1c3   : > { %579 = vst [vmem:[#allocation3] sm:$0xff] %v578_v25 }
 0x1ca   :  { %v580_v27 = vld [vmem:[#allocation3] sm:$0xff] }
 0x1cb   :  { %v588_v30 = vmul.f32 %v657_v28, %v580_v27 }
 0x1cd   :  { %v596_v32 = vadd.f32 %v658_v29, %v588_v30 }
 0x1cf   :  { %v597_v34 = vmax.f32 %v596_v32, 0.0 }
 0x1d1   :  { %v598_v35 = vpack.c.bf16 %v597_v34, %v597_v34 }
 0x1d3   :  { %599 = vst [vmem:[#allocation7] sm:$0xf] %v598_v35 }
 0x1d4   :  { %801 = shalt.err (!%p798_p10)
}
 0x1d5   :  { %609 = dma.vmem_to_hbm [thread:$0]  %s607_s27, 64, %s1111_s7, [#allocation6]  }
 0x1d6   :  { %816 = dma.done.wait [#allocation6], 64  }
 0x1d7   :  { %817 = vsyncadd [#allocation6], 4294967232 }
 0x1d8   :  { %613 = vsyncpa [#allocation5], 1 }
 0x1d9   :  { %614 = vsyncpa [#allocation6], 1 }

</bundles_post_ra>
